<compile_context>
chip_gen: v6e
topology: v6e:2x2x1
jax: 0.10.0
libtpu: 0.0.40
codegen_flags: <defaults>
</compile_context>

<pallas_src>
import math

import jax
import jax.numpy as jnp
from jax.experimental import pallas as pl
from jax.experimental.pallas import tpu as pltpu


def _timestep_embedder_kernel(
    ts_ref,                              # SMEM [B] int32  (scalar prefetch)
    pe_ref,                              # HBM  [max_len, D] (memory_space=pl.ANY)
    w1_ref, b1_ref, w2_ref, b2_ref,      # VMEM [D,D], [1,D], [D,D], [1,D]
    o_ref,                               # VMEM [tm, D] view of the [1, B, D] output
    x_buf,                               # VMEM scratch [tm, D] f32 (gathered pe rows)
    sem,                                 # shared DMA semaphore
):
    i = pl.program_id(0)
    tm, _ = x_buf.shape
    max_len = pe_ref.shape[0]
    base = i * tm

    # ---- Fused gather: DMA each needed pe row straight from HBM into VMEM.
    #      All copies are issued back-to-back (in flight concurrently) on one
    #      shared DMA semaphore, then drained with one wait per row-sized copy.
    @pl.loop(0, tm)
    def _issue(r):
        t = ts_ref[base + r]
        t = jnp.clip(t, 0, max_len - 1)   # match JAX clamp-on-OOB gather semantics
        pltpu.make_async_copy(
            pe_ref.at[pl.ds(t, 1), :],
            x_buf.at[pl.ds(r, 1), :],
            sem,
        ).start()

    @pl.loop(0, tm)
    def _drain(r):
        pltpu.make_async_copy(
            pe_ref.at[pl.ds(0, 1), :],
            x_buf.at[pl.ds(0, 1), :],
            sem,
        ).wait()

    # ---- MLP: SiLU(x @ W1 + b1) @ W2 + b2, f32 accumulation on the MXU.
    x = x_buf[...]
    h = jnp.dot(x, w1_ref[...], preferred_element_type=jnp.float32) + b1_ref[...]
    h = h * jax.nn.sigmoid(h)             # SiLU
    y = jnp.dot(h, w2_ref[...], preferred_element_type=jnp.float32) + b2_ref[...]
    o_ref[...] = y.astype(o_ref.dtype)


def _pick_block_b(B):
    """Batch row tile: single step for small B, else largest divisor <= 512."""
    if B <= 512:
        return B
    for cand in (512, 256, 128, 64, 32, 16, 8):
        if B % cand == 0:
            return cand
    return B  # fallback: one big tile (correct, just unpipelined)


@jax.jit
def timestep_embedder_forward(timesteps, pe, w1, b1, w2, b2):
    """TimestepEmbedder.forward: time_embed(pe[timesteps]).permute(1, 0, 2).

    timesteps: [B] int32; pe: [max_len, 1, D]; w*: [D_in, D_out]; b*: [1, D].
    Returns [1, B, D].
    """
    B = timesteps.shape[0]
    max_len, _, D = pe.shape
    pe2d = pe.reshape(max_len, D)         # middle dim is 1 -> layout-free reshape

    tm = _pick_block_b(B)
    assert B % tm == 0, (B, tm)
    grid_b = B // tm

    const2 = lambda i, ts: (0, 0)         # weights/biases stay VMEM-resident

    return pl.pallas_call(
        _timestep_embedder_kernel,
        out_shape=jax.ShapeDtypeStruct((1, B, D), w1.dtype),
        grid_spec=pltpu.PrefetchScalarGridSpec(
            num_scalar_prefetch=1,        # timesteps -> SMEM, passed to index_maps
            grid=(grid_b,),
            in_specs=[
                pl.BlockSpec(memory_space=pl.ANY),    # pe: stays in HBM, gathered in-kernel
                pl.BlockSpec((D, D), const2),         # W1
                pl.BlockSpec((1, D), const2),         # b1
                pl.BlockSpec((D, D), const2),         # W2
                pl.BlockSpec((1, D), const2),         # b2
            ],
            out_specs=pl.BlockSpec((None, tm, D), lambda i, ts: (0, i, 0)),
            scratch_shapes=[
                pltpu.VMEM((tm, D), jnp.float32),
                pltpu.SemaphoreType.DMA(()),
            ],
        ),
        compiler_params=pltpu.CompilerParams(
            dimension_semantics=("parallel",),
        ),
    )(timesteps, pe2d, w1, b1, w2, b2)


def make_sinusoidal_pe(max_len, d_model, dtype=jnp.float32):
    """Standard MDM PositionalEncoding buffer, shape [max_len, 1, d_model]."""
    position = jnp.arange(max_len, dtype=jnp.float32)[:, None]           # [L, 1]
    div_term = jnp.exp(
        jnp.arange(0, d_model, 2, dtype=jnp.float32)
        * (-math.log(10000.0) / d_model)
    )                                                                     # [D/2]
    angles = position * div_term                                          # [L, D/2]
    pe = jnp.zeros((max_len, d_model), dtype=jnp.float32)
    pe = pe.at[:, 0::2].set(jnp.sin(angles))
    pe = pe.at[:, 1::2].set(jnp.cos(angles))
    return pe[:, None, :].astype(dtype)                                   # [L, 1, D]


if __name__ == "__main__":
    latent_dim = 32
    max_len = 64
    batch = 8

    key = jax.random.PRNGKey(0)
    k1, k2, k3, k4, k5 = jax.random.split(key, 5)

    # Deterministic synthetic parameters (shapes from nn.Linear(D, D) x2).
    # Stored as [D_in, D_out] so the kernel does x @ W + b.
    bound = 1.0 / math.sqrt(latent_dim)
    w1 = jax.random.uniform(k1, (latent_dim, latent_dim), jnp.float32, -bound, bound)
    b1 = jax.random.uniform(k2, (1, latent_dim), jnp.float32, -bound, bound)
    w2 = jax.random.uniform(k3, (latent_dim, latent_dim), jnp.float32, -bound, bound)
    b2 = jax.random.uniform(k4, (1, latent_dim), jnp.float32, -bound, bound)

    pe = make_sinusoidal_pe(max_len, latent_dim)
    timesteps = jax.random.randint(k5, (batch,), 0, max_len, dtype=jnp.int32)

    out = timestep_embedder_forward(timesteps, pe, w1, b1, w2, b2)
    out = jax.block_until_ready(out)
    assert out.shape == (1, batch, latent_dim), out.shape

    # Pure-JAX reference check of the full fused path (gather + MLP + permute).
    x_ref = pe[timesteps].reshape(batch, latent_dim)
    h_ref = x_ref @ w1 + b1
    h_ref = h_ref * jax.nn.sigmoid(h_ref)
    y_ref = (h_ref @ w2 + b2).reshape(batch, 1, latent_dim).transpose(1, 0, 2)
    assert jnp.allclose(out, y_ref, atol=1e-5, rtol=1e-5), float(
        jnp.max(jnp.abs(out - y_ref))
    )

    print("KERNEL_OK")
</pallas_src>

<mosaic_0001>
module attributes {stable_mosaic.version = 11 : i64} {
  func.func @_timestep_embedder_kernel(%arg0: i32, %arg1: memref<8xi32, #tpu.memory_space<smem>>, %arg2: memref<64x32xf32, #tpu.memory_space<any>>, %arg3: memref<32x32xf32, #tpu.memory_space<vmem>>, %arg4: memref<1x32xf32, #tpu.memory_space<vmem>>, %arg5: memref<32x32xf32, #tpu.memory_space<vmem>>, %arg6: memref<1x32xf32, #tpu.memory_space<vmem>>, %arg7: memref<1x8x32xf32, #tpu.memory_space<vmem>>, %arg8: memref<8x32xf32, #tpu.memory_space<vmem>>, %arg9: memref<!tpu.dma_semaphore, #tpu.memory_space<semaphore_mem>>) attributes {dimension_semantics = [#tpu.dimension_semantics<parallel>], iteration_bounds = array<i64: 1>, scalar_prefetch = 1 : i64, scratch_operands = 2 : i64, tpu.core_type = #tpu.core_type<tc>, window_params = [{}, {pipeline_mode = #tpu.pipeline_mode<synchronous>, transform_indices = @transform_1, window_bounds = array<i64: 32, 32>}, {pipeline_mode = #tpu.pipeline_mode<synchronous>, transform_indices = @transform_2, window_bounds = array<i64: 1, 32>}, {pipeline_mode = #tpu.pipeline_mode<synchronous>, transform_indices = @transform_3, window_bounds = array<i64: 32, 32>}, {pipeline_mode = #tpu.pipeline_mode<synchronous>, transform_indices = @transform_4, window_bounds = array<i64: 1, 32>}, {transform_indices = @transform_5, window_bounds = array<i64: 1, 8, 32>}]} {
    %c8_i32 = arith.constant 8 : i32
    %0 = arith.muli %arg0, %c8_i32 : i32
    %c0_i32 = arith.constant 0 : i32
    %c8_i32_0 = arith.constant 8 : i32
    %1 = arith.addi %c0_i32, %c8_i32_0 : i32
    %c1_i32 = arith.constant 1 : i32
    scf.for %arg10 = %c0_i32 to %1 step %c1_i32  : i32 {
      %c1_i32_19 = arith.constant 1 : i32
      %23 = arith.muli %arg10, %c1_i32_19 : i32
      %c0_i32_20 = arith.constant 0 : i32
      %24 = arith.addi %c0_i32_20, %23 : i32
      %25 = arith.addi %0, %24 : i32
      %26 = arith.index_cast %25 : i32 to index
      %27 = memref.load %arg1[%26] : memref<8xi32, #tpu.memory_space<smem>>
      %c0_i32_21 = arith.constant 0 : i32
      %c63_i32 = arith.constant 63 : i32
      %28 = arith.maxsi %c0_i32_21, %27 : i32
      %29 = arith.minsi %c63_i32, %28 : i32
      %c0_i32_22 = arith.constant 0 : i32
      %30 = tpu.memref_slice %arg2[%29, %c0_i32_22] : memref<64x32xf32, #tpu.memory_space<any>> -> memref<1x32xf32, #tpu.memory_space<any>>
      %c0_i32_23 = arith.constant 0 : i32
      %31 = tpu.memref_slice %arg8[%24, %c0_i32_23] : memref<8x32xf32, #tpu.memory_space<vmem>> -> memref<1x32xf32, #tpu.memory_space<vmem>>
      tpu.enqueue_dma source(%30 : memref<1x32xf32, #tpu.memory_space<any>>) target(%31 : memref<1x32xf32, #tpu.memory_space<vmem>>) target_semaphore(%arg9 : memref<!tpu.dma_semaphore, #tpu.memory_space<semaphore_mem>>)
    }
    %c8_i32_1 = arith.constant 8 : i32
    %c0_i32_2 = arith.constant 0 : i32
    %c8_i32_3 = arith.constant 8 : i32
    %2 = arith.addi %c0_i32_2, %c8_i32_3 : i32
    %c1_i32_4 = arith.constant 1 : i32
    scf.for %arg10 = %c0_i32_2 to %2 step %c1_i32_4  : i32 {
      %c0_i32_19 = arith.constant 0 : i32
      %c0_i32_20 = arith.constant 0 : i32
      %23 = tpu.memref_slice %arg2[%c0_i32_19, %c0_i32_20] : memref<64x32xf32, #tpu.memory_space<any>> -> memref<1x32xf32, #tpu.memory_space<any>>
      %c0_i32_21 = arith.constant 0 : i32
      %c0_i32_22 = arith.constant 0 : i32
      %24 = tpu.memref_slice %arg8[%c0_i32_21, %c0_i32_22] : memref<8x32xf32, #tpu.memory_space<vmem>> -> memref<1x32xf32, #tpu.memory_space<vmem>>
      tpu.wait_dma2 semaphore(%arg9 : memref<!tpu.dma_semaphore, #tpu.memory_space<semaphore_mem>>) src(%23 : memref<1x32xf32, #tpu.memory_space<any>>) dst(%24 : memref<1x32xf32, #tpu.memory_space<vmem>>)
    }
    %c0 = arith.constant 0 : index
    %c0_5 = arith.constant 0 : index
    %3 = vector.load %arg8[%c0, %c0_5] : memref<8x32xf32, #tpu.memory_space<vmem>>, vector<8x32xf32>
    %c0_6 = arith.constant 0 : index
    %c0_7 = arith.constant 0 : index
    %4 = vector.load %arg3[%c0_6, %c0_7] : memref<32x32xf32, #tpu.memory_space<vmem>>, vector<32x32xf32>
    %cst = arith.constant dense<0.000000e+00> : vector<8x32xf32>
    %5 = tpu.matmul %3, %4, %cst {dimension_numbers = #tpu.dot_dimension_numbers<[1], [0], [0], [1], [0, 0, 1, 1], [], []>} : vector<8x32xf32>, vector<32x32xf32>, vector<8x32xf32> -> vector<8x32xf32>
    %c0_8 = arith.constant 0 : index
    %c0_9 = arith.constant 0 : index
    %6 = vector.load %arg4[%c0_8, %c0_9] : memref<1x32xf32, #tpu.memory_space<vmem>>, vector<1x32xf32>
    %7 = vector.broadcast %6 : vector<1x32xf32> to vector<8x32xf32>
    %8 = arith.addf %5, %7 : vector<8x32xf32>
    %9 = arith.negf %8 : vector<8x32xf32>
    %10 = math.exp %9 : vector<8x32xf32>
    %cst_10 = arith.constant 1.000000e+00 : f32
    %11 = vector.broadcast %cst_10 : f32 to vector<8x32xf32>
    %12 = arith.addf %11, %10 : vector<8x32xf32>
    %13 = arith.divf %11, %12 : vector<8x32xf32>
    %14 = arith.mulf %8, %13 : vector<8x32xf32>
    %c0_11 = arith.constant 0 : index
    %c0_12 = arith.constant 0 : index
    %15 = vector.load %arg5[%c0_11, %c0_12] : memref<32x32xf32, #tpu.memory_space<vmem>>, vector<32x32xf32>
    %cst_13 = arith.constant dense<0.000000e+00> : vector<8x32xf32>
    %16 = tpu.matmul %14, %15, %cst_13 {dimension_numbers = #tpu.dot_dimension_numbers<[1], [0], [0], [1], [0, 0, 1, 1], [], []>} : vector<8x32xf32>, vector<32x32xf32>, vector<8x32xf32> -> vector<8x32xf32>
    %c0_14 = arith.constant 0 : index
    %c0_15 = arith.constant 0 : index
    %17 = vector.load %arg6[%c0_14, %c0_15] : memref<1x32xf32, #tpu.memory_space<vmem>>, vector<1x32xf32>
    %18 = vector.broadcast %17 : vector<1x32xf32> to vector<8x32xf32>
    %19 = arith.addf %16, %18 : vector<8x32xf32>
    %c0_16 = arith.constant 0 : index
    %c0_17 = arith.constant 0 : index
    %c0_18 = arith.constant 0 : index
    %20 = vector.load %arg7[%c0_16, %c0_17, %c0_18] : memref<1x8x32xf32, #tpu.memory_space<vmem>>, vector<1x8x32xf32>
    %21 = vector.shape_cast %20 : vector<1x8x32xf32> to vector<8x32xf32>
    %22 = vector.shape_cast %19 : vector<8x32xf32> to vector<1x8x32xf32>
    tpu.vector_store %arg7[%c0_16, %c0_17, %c0_18], %22 {strides = array<i32>} : memref<1x8x32xf32, #tpu.memory_space<vmem>>, vector<1x8x32xf32>,
    return
  }
  func.func @transform_1(%arg0: i32, %arg1: memref<8xi32, #tpu.memory_space<smem>>) -> (i32, i32) {
    %c0_i32 = arith.constant 0 : i32
    %c0_i32_0 = arith.constant 0 : i32
    %c0_i32_1 = arith.constant 0 : i32
    return %c0_i32, %c0_i32_0 : i32, i32
  }
  func.func @transform_2(%arg0: i32, %arg1: memref<8xi32, #tpu.memory_space<smem>>) -> (i32, i32) {
    %c0_i32 = arith.constant 0 : i32
    %c0_i32_0 = arith.constant 0 : i32
    %c0_i32_1 = arith.constant 0 : i32
    return %c0_i32, %c0_i32_0 : i32, i32
  }
  func.func @transform_3(%arg0: i32, %arg1: memref<8xi32, #tpu.memory_space<smem>>) -> (i32, i32) {
    %c0_i32 = arith.constant 0 : i32
    %c0_i32_0 = arith.constant 0 : i32
    %c0_i32_1 = arith.constant 0 : i32
    return %c0_i32, %c0_i32_0 : i32, i32
  }
  func.func @transform_4(%arg0: i32, %arg1: memref<8xi32, #tpu.memory_space<smem>>) -> (i32, i32) {
    %c0_i32 = arith.constant 0 : i32
    %c0_i32_0 = arith.constant 0 : i32
    %c0_i32_1 = arith.constant 0 : i32
    return %c0_i32, %c0_i32_0 : i32, i32
  }
  func.func @transform_5(%arg0: i32, %arg1: memref<8xi32, #tpu.memory_space<smem>>) -> (i32, i32, i32) {
    %c0_i32 = arith.constant 0 : i32
    %c0_i32_0 = arith.constant 0 : i32
    %c0_i32_1 = arith.constant 0 : i32
    return %c0_i32, %arg0, %c0_i32_0 : i32, i32, i32
  }
}

</mosaic_0001>

<bundles_post_ra>
// kernel: timestep_embedder_forward.1
= control target key start
LH: loop header
LB: loop body
LE: loop exit
PB: predicated region body
PF: predicated region fallthrough
CT: control target
= control target key end

     0   :  { %s520_s0 = inlined_call_operand.vmem [shape: s32[8], index: 0, kind: input, shape index: {}]   ;;  %s521_s1 = inlined_call_operand.vmem [shape: f32[64,32], index: 1, kind: input, shape index: {}]   ;;  %s522_s2 = inlined_call_operand.vmem [shape: f32[32,32], index: 2, kind: input, shape index: {}]   ;;  %s523_s3 = inlined_call_operand.vmem [shape: f32[1,32], index: 3, kind: input, shape index: {}]   ;;  %s524_s4 = inlined_call_operand.vmem [shape: f32[32,32], index: 4, kind: input, shape index: {}]   ;;  %s525_s5 = inlined_call_operand.vmem [shape: f32[1,32], index: 5, kind: input, shape index: {}]   ;;  %s526_s6 = inlined_call_operand.hbm [shape: f32[1,8,32], index: 6, kind: output, shape index: {}]  }
   0x1   :  { %s11_s23 = sshll.u32 %s520_s0, 4  ;;  %s12_s23 = int_to_ptr.vmem [resolvable:$true] %s11_s23 }
   0x2   :  { %s385_s24 = scalar_lea.vmem %s12_s23, 16  ;;  %p390_p1 = scmp.lt.s32.totalorder %s12_s23, %s12_s23 }
   0x3   :  { %p386_p0 = scmp.ne.s32.totalorder %s12_s23, %s385_s24  ;;  %p391_p2 = scmp.lt.s32.totalorder %s385_s24, %s385_s24 }
   0x5   :  { %p392_p3 = por %p391_p2, %p390_p1 }
   0x7   :  { %p393_p4 = pnand %p392_p3, %p386_p0 }
   0x9   :  { %396 = shalt.err (!%p393_p4)  }
   0xa   :  { %s439_s25 = smov [#allocation5]  }
   0xb   :  { %14 = dma.vmem_to_smem %s12_s23, 16, %s439_s25, [#allocation4] }
   0xc   :  { %425 = dma.done.wait [#allocation4], 16 }
   0xd   :  { %426 = vsyncadd [#allocation4], 4294967280 }
   0xe   :  { %16 = sfence }
   0xf   :  { %17 = vsyncpa [#allocation7], 0  ;;  %s431_s26 = smov 0  }
  0x10 LB: > { %s34_s27 = sld [smem:[#allocation5 + %s433_s26]]  ;;  %s40_s30 = scalar_lea.vmem [#allocation2], %s433_s26  ;;  %s433_s26 = sphi %s431_s26, %s32_s26  }
  0x16   : > { %p35_p5 = scmp.gt.s32.totalorder %s34_s27, 0  ;;  %p316_p6 = scmp.lt.s32.totalorder %s34_s27, 63 }
  0x18   : > { %s528_s27 = smov (!%p35_p5, %s34_s27), 0 }
  0x19   : > { %s530_s27 = smov (!%p316_p6, %s528_s27), 63 }
  0x1a   : > { %s39_s29 = scalar_lea.vmem %s521_s1, %s530_s27 }
  0x1b   : > { %v59_v0 = vld [vmem:[%s39_s29] sm:$0x1] }
  0x1c   : > { %60 = vst [vmem:[%s40_s30] sm:$0x1] %v59_v0 }
  0x1d   : > { %86 = vsyncadd [#allocation3], 16  ;;  %s32_s26 = sadd.s32 1, %s433_s26  }
  0x1e   : > { %p29_p7 = scmp.ge.s32.totalorder %s32_s26, 8  }
  0x1f   :  { %s435_s7 = smov (%p29_p7), 0  }
  0x20   :  { %31 = sbr.rel (!%p29_p7) target bundleno = 16 (0x10), region = 92 }
  0x25 LB: > { %427 = dma.done.wait [#allocation3], 16  ;;  %s437_s7 = sphi %s435_s7, %s92_s7  }
  0x26   : > { %428 = vsyncadd [#allocation3], 4294967280  ;;  %s92_s7 = sadd.s32 1, %s437_s7  }
  0x27   : > { %p89_p8 = scmp.ge.s32.totalorder %s92_s7, 8  }
  0x28   :  { %v100_v1 = vld [vmem:[%s522_s2 + $0x18] sm:$0xff] (%p89_p8)  ;;  %v440_v2 = vmov (%p89_p8), 0.0   ;;  %v99_v3 = vld [vmem:[%s522_s2 + $0x10] sm:$0xff] (%p89_p8)  ;;  %vm441_vm0 = vmmov (%p89_p8), 0   ;;  %v98_v4 = vld [vmem:[%s522_s2 + $0x8] sm:$0xff] (%p89_p8)  ;;  %vm108_vm1 = vcmask (%p89_p8), 261120  }
  0x29   :  { %91 = sbr.rel (!%p89_p8) target bundleno = 37 (0x25), region = 103  ;;  %339 = vmatprep.subr.mxu0 (%p89_p8), %v440_v2  ;;  %347 = vmatprep.mubr.msk.f32.mxu0 (%p89_p8), %vm441_vm0, %v440_v2  ;;  %v97_v5 = vld [vmem:[%s522_s2] sm:$0xff] (%p89_p8)  ;;  %v192_v7 = vld [vmem:[%s524_s4 + $0x18] sm:$0xff] (%p89_p8)  ;;  %v191_v8 = vld [vmem:[%s524_s4 + $0x10] sm:$0xff] (%p89_p8) }
  0x2a   :  { %340 = vmatpush3.msra.mxu0 (%p89_p8), %v100_v1  ;;  %350 = vmatprep.subr.mxu1 (%p89_p8), %v440_v2  ;;  %v96_v6 = vld [vmem:[#allocation2] sm:$0xff] (%p89_p8)  ;;  %v190_v9 = vld [vmem:[%s524_s4 + $0x8] sm:$0xff] (%p89_p8) }
  0x2b   :  { %341 = vmatprep.subr.mxu0 (%p89_p8), %v440_v2  ;;  %358 = vmatprep.mubr.msk.f32.mxu1 (%p89_p8), %vm441_vm0, %v440_v2  ;;  %v189_v10 = vld [vmem:[%s524_s4] sm:$0xff] (%p89_p8)  ;;  %s442_s4 = smov (%p89_p8), [#allocation6]  }
  0x2c   :  { %342 = vmatpush3.msra.mxu0 (%p89_p8), %v99_v3  ;;  %351 = vmatpush3.msra.mxu1 (%p89_p8), %v192_v7  ;;  %v321_v11 = vld [vmem:[%s523_s3] ss:$0 sm:$0xff] (%p89_p8)  ;;  %s280_s26 = sshll.u32 (%p89_p8), %s442_s4, 4  ;;  %s281_s26 = int_to_ptr.vmem [resolvable:$true] %s280_s26 }
  0x2d   :  { %343 = vmatprep.subr.mxu0 (%p89_p8), %v440_v2  ;;  %352 = vmatprep.subr.mxu1 (%p89_p8), %v440_v2  ;;  %v324_v20 = vld [vmem:[%s525_s5] ss:$0 sm:$0xff] (%p89_p8)  ;;  %s397_s3 = scalar_lea.vmem (%p89_p8), %s281_s26, 128  ;;  %p402_p10 = scmp.lt.s32.totalorder (%p89_p8), %s281_s26, %s281_s26 }
  0x2e   :  { %344 = vmatpush3.msra.mxu0 %v98_v4  ;;  %353 = vmatpush3.msra.mxu1 %v191_v8  ;;  %p398_p9 = scmp.ne.s32.totalorder %s281_s26, %s397_s3  ;;  %p403_p11 = scmp.lt.s32.totalorder %s397_s3, %s397_s3 }
  0x2f   :  { %345 = vmatprep.subr.mxu0 %v440_v2  ;;  %354 = vmatprep.subr.mxu1 %v440_v2 }
  0x30   :  { %346 = vmatpush3.msra.mxu0 %v97_v5  ;;  %355 = vmatpush3.msra.mxu1 %v190_v9  ;;  %p404_p12 = por %p403_p11, %p402_p10 }
  0x31   :  { %348 = vmatmul.mubr.msk.f32.vlgmr.msra.gmra.mxu0 %vm108_vm1, %v96_v6  ;;  %356 = vmatprep.subr.mxu1 %v440_v2 }
  0x32   :  { %357 = vmatpush3.msra.mxu1 %v189_v10  ;;  %p405_p13 = pnand %p404_p12, %p398_p9 }
  0xf1   :  { %v178_v12 = vpop.f32.mrf.mxu0 }
  0xf2   :  { %v179_v13 = vadd.f32 %v321_v11, %v178_v12 }
  0xf3   :  { %v349_v14 = vpop.f32.mrf.mxu0 }
  0xf4   :  { %v323_v15 = vmul.f32 -1.442695, %v179_v13 }
  0xf6   :  { %381 = vpow2.f32 %v323_v15 }
 0x103   :  { %v382_v16 = vpop.eup %381 }
 0x104   :  { %v185_v17 = vadd.f32 1.0, %v382_v16 }
 0x106   :  { %383 = vrcp.f32 %v185_v17 }
 0x113   :  { %v384_v18 = vpop.eup %383 }
 0x114   :  { %v188_v19 = vmul.f32 %v384_v18, %v179_v13 }
 0x116   :  { %359 = vmatmul.mubr.msk.f32.vlgmr.msra.gmra.mxu1 %vm108_vm1, %v188_v19 }
 0x1d6   :  { %v269_v21 = vpop.f32.mrf.mxu1 }
 0x1d7   :  { %v270_v22 = vadd.f32 %v324_v20, %v269_v21 }
 0x1d8   :  { %v360_v23 = vpop.f32.mrf.mxu1 }
 0x1d9   :  { %273 = vst.msk [vmem:[#allocation6] sm:$0xff] %vm108_vm1, %v270_v22 }
 0x1da   :  { %408 = shalt.err (!%p405_p13)
}
 0x1db   :  { %283 = dma.vmem_to_hbm [thread:$0]  %s281_s26, 128, %s526_s6, [#allocation7]  }
 0x1dc   :  { %429 = dma.done.wait [#allocation7], 128  }
 0x1dd   :  { %430 = vsyncadd [#allocation7], 4294967168 }
 0x1de   :  { %287 = vsyncpa [#allocation7], 1 }
 0x1df   :  { %288 = vsyncmov [#allocation3] }
 0x1e2   :  { %s289_s5 = vpop.sfrf %288 }
 0x1e3   :  { %p326_p0 = scmp.ne.s32.totalorder %s289_s5, 0 }
 0x1e5   :  { %293 = shalt.err (%p326_p0)  }

</bundles_post_ra>
